<compile_context>
chip_gen: v6e
topology: v6e:2x2x1
jax: 0.10.0
libtpu: 0.0.40
codegen_flags: <defaults>
</compile_context>

<pallas_src>
import functools

import jax
import jax.numpy as jnp
from jax.experimental import pallas as pl
from jax.experimental.pallas import tpu as pltpu


# ---------------- fused single-pass kernel (whole array resident in VMEM) ----
def _fused_kernel(x_ref, o_ref, *, n_elems):
    x = x_ref[...]
    total = jnp.sum(x, dtype=jnp.float32)
    # 1/mean = N / sum : one scalar divide, then elementwise VPU multiplies.
    inv_mean = (jnp.float32(n_elems) / total).astype(o_ref.dtype)
    o_ref[...] = x * inv_mean


# ---------------- two-pass kernels (large inputs) -----------------------------
def _sum_kernel(x_ref, total_ref, acc_ref):
    r = pl.program_id(0)
    t = pl.program_id(1)

    @pl.when(jnp.logical_and(r == 0, t == 0))
    def _init():
        acc_ref[0] = jnp.float32(0.0)

    # f32 accumulation without materializing an f32 copy of the whole block.
    acc_ref[0] += jnp.sum(x_ref[...], dtype=jnp.float32)

    @pl.when(jnp.logical_and(r == pl.num_programs(0) - 1,
                             t == pl.num_programs(1) - 1))
    def _finalize():
        total_ref[0] = acc_ref[0]


def _scale_kernel(total_ref, x_ref, o_ref, *, n_elems):
    # One scalar divide per tile (scalar path), elementwise VPU multiplies in
    # the input dtype.
    inv_mean = (jnp.float32(n_elems) / total_ref[0]).astype(o_ref.dtype)
    o_ref[...] = x_ref[...] * inv_mean


# ---------------- tiling helpers ----------------------------------------------
_FUSED_BYTES_LIMIT = 8 * 1024 * 1024       # in + out = 16 MiB of VMEM, max
_TWO_PASS_BLOCK_BYTES = 2 * 1024 * 1024    # ~85% of HBM roofline per the ref


def _pick_tile(dim, base, max_elems):
    """Largest tile dividing `dim`, multiple of `base`, <= max_elems; else full dim."""
    if dim <= base or dim % base != 0:
        return dim  # full-extent blocks are always legal
    t = min(dim, max(base, (max_elems // base) * base))
    while t > base and dim % t != 0:
        t -= base
    return t if dim % t == 0 else dim


# ---------------- public wrapper ----------------------------------------------
def standardlize(x, *, force_two_pass=False):
    """x / x.mean() for an NCHW tensor (matches Standardlize.forward)."""
    B, C, H, W = x.shape
    R = B * C
    HW = H * W
    n_elems = R * HW
    itemsize = jnp.dtype(x.dtype).itemsize
    total_bytes = n_elems * itemsize
    xr = x.reshape(R, HW)

    # ---- fast path: whole tensor fits in VMEM -> single pass, 2N bytes ----
    if total_bytes <= _FUSED_BYTES_LIMIT and not force_two_pass:
        out = pl.pallas_call(
            functools.partial(_fused_kernel, n_elems=float(n_elems)),
            out_shape=jax.ShapeDtypeStruct((R, HW), x.dtype),
            grid=(1,),
            in_specs=[pl.BlockSpec((R, HW), lambda i: (0, 0))],
            out_specs=pl.BlockSpec((R, HW), lambda i: (0, 0)),
            compiler_params=pltpu.CompilerParams(
                vmem_limit_bytes=32 * 1024 * 1024),
            cost_estimate=pl.CostEstimate(
                flops=2 * n_elems, transcendentals=0,
                bytes_accessed=2 * total_bytes),
        )(xr)
        return out.reshape(B, C, H, W)

    # ---- two-pass path for larger inputs ----
    T = _pick_tile(HW, 128, _TWO_PASS_BLOCK_BYTES // (8 * itemsize))
    Rt = _pick_tile(R, 8, max(8, _TWO_PASS_BLOCK_BYTES // (T * itemsize)))
    grid = (R // Rt, HW // T)

    # pass 1: global sum (carried SMEM accumulator -> "arbitrary" grid)
    total = pl.pallas_call(
        _sum_kernel,
        out_shape=jax.ShapeDtypeStruct((1,), jnp.float32),
        grid=grid,
        in_specs=[pl.BlockSpec((Rt, T), lambda r, t: (r, t))],
        out_specs=pl.BlockSpec(memory_space=pltpu.MemorySpace.SMEM),
        scratch_shapes=[pltpu.SMEM((1,), jnp.float32)],
        compiler_params=pltpu.CompilerParams(
            dimension_semantics=("arbitrary", "arbitrary")),
        cost_estimate=pl.CostEstimate(
            flops=n_elems, transcendentals=0,
            bytes_accessed=total_bytes + 4),
    )(xr)

    # pass 2: elementwise scale (fully parallel, lane-dense tiles)
    out = pl.pallas_call(
        functools.partial(_scale_kernel, n_elems=float(n_elems)),
        out_shape=jax.ShapeDtypeStruct((R, HW), x.dtype),
        grid=grid,
        in_specs=[pl.BlockSpec(memory_space=pltpu.MemorySpace.SMEM),  # sum (scalar)
                  pl.BlockSpec((Rt, T), lambda r, t: (r, t))],        # x tile
        out_specs=pl.BlockSpec((Rt, T), lambda r, t: (r, t)),
        compiler_params=pltpu.CompilerParams(
            dimension_semantics=("parallel", "parallel")),
        cost_estimate=pl.CostEstimate(
            flops=n_elems, transcendentals=0,
            bytes_accessed=2 * total_bytes + 4),
    )(total, xr)

    return out.reshape(B, C, H, W)


def _standardlize_ref(x):
    return x / jnp.mean(x)


if __name__ == "__main__":
    key = jax.random.PRNGKey(0)
    # small NCHW input consistent with the module's usage; offset keeps the
    # global mean safely away from zero so the division is well conditioned.
    x = jax.random.normal(key, (2, 4, 16, 16), dtype=jnp.float32) + 1.0

    ref = _standardlize_ref(x)

    # fused single-pass path (the one the small example takes)
    out = jax.block_until_ready(standardlize(x))
    assert out.shape == x.shape
    assert jnp.allclose(out, ref, atol=1e-5, rtol=1e-5), (
        float(jnp.max(jnp.abs(out - ref))))

    # also exercise the two-pass (large-input) path at the same small shape
    out2 = jax.block_until_ready(standardlize(x, force_two_pass=True))
    assert jnp.allclose(out2, ref, atol=1e-5, rtol=1e-5), (
        float(jnp.max(jnp.abs(out2 - ref))))

    print("KERNEL_OK")
</pallas_src>

<mosaic_0001>
module attributes {stable_mosaic.version = 11 : i64} {
  func.func @_fused_kernel(%arg0: i32, %arg1: memref<8x256xf32, #tpu.memory_space<vmem>>, %arg2: memref<8x256xf32, #tpu.memory_space<vmem>>) attributes {dimension_semantics = [#tpu.dimension_semantics<arbitrary>], iteration_bounds = array<i64: 1>, scalar_prefetch = 0 : i64, scratch_operands = 0 : i64, tpu.core_type = #tpu.core_type<tc>, window_params = [{pipeline_mode = #tpu.pipeline_mode<synchronous>, transform_indices = @transform_0, window_bounds = array<i64: 8, 256>}, {pipeline_mode = #tpu.pipeline_mode<synchronous>, transform_indices = @transform_1, window_bounds = array<i64: 8, 256>}]} {
    %c0 = arith.constant 0 : index
    %c0_0 = arith.constant 0 : index
    %0 = vector.load %arg1[%c0, %c0_0] : memref<8x256xf32, #tpu.memory_space<vmem>>, vector<8x256xf32>
    %1 = vector.shape_cast %0 : vector<8x256xf32> to vector<1x8x256xf32>
    %cst = arith.constant dense<0.000000e+00> : vector<1xf32>
    %2 = vector.multi_reduction <add>, %1, %cst [1, 2] : vector<1x8x256xf32> to vector<1xf32>
    %3 = vector.shape_cast %2 : vector<1xf32> to vector<1x1x1xf32>
    %4 = vector.extract %3[0, 0, 0] : f32 from vector<1x1x1xf32>
    %cst_1 = arith.constant 2.048000e+03 : f32
    %5 = arith.divf %cst_1, %4 : f32
    %6 = vector.broadcast %5 : f32 to vector<8x256xf32>
    %7 = arith.mulf %0, %6 : vector<8x256xf32>
    %c0_2 = arith.constant 0 : index
    %c0_3 = arith.constant 0 : index
    %8 = vector.load %arg2[%c0_2, %c0_3] : memref<8x256xf32, #tpu.memory_space<vmem>>, vector<8x256xf32>
    tpu.vector_store %arg2[%c0_2, %c0_3], %7 {strides = array<i32>} : memref<8x256xf32, #tpu.memory_space<vmem>>, vector<8x256xf32>,
    return
  }
  func.func @transform_0(%arg0: i32) -> (i32, i32) {
    %c0_i32 = arith.constant 0 : i32
    %c0_i32_0 = arith.constant 0 : i32
    %c0_i32_1 = arith.constant 0 : i32
    return %c0_i32, %c0_i32_0 : i32, i32
  }
  func.func @transform_1(%arg0: i32) -> (i32, i32) {
    %c0_i32 = arith.constant 0 : i32
    %c0_i32_0 = arith.constant 0 : i32
    %c0_i32_1 = arith.constant 0 : i32
    return %c0_i32, %c0_i32_0 : i32, i32
  }
}

</mosaic_0001>

<bundles_post_ra>
// kernel: tpu_custom_call.1
= control target key start
LH: loop header
LB: loop body
LE: loop exit
PB: predicated region body
PF: predicated region fallthrough
CT: control target
= control target key end

     0   :  { %6 = vsyncpa [#allocation3], 0  ;;  %s127_s0 = inlined_call_operand.hbm [shape: f32[8,256], index: 0, kind: input, shape index: {}]   ;;  %s128_s1 = inlined_call_operand.hbm [shape: f32[8,256], index: 1, kind: output, shape index: {}]  }
   0x1   :  { %7 = vsyncpa [#allocation4], 0  ;;  %s109_s6 = smov [#allocation2]  }
   0x2   :  { %s14_s7 = sshll.u32 %s109_s6, 4  ;;  %s15_s7 = int_to_ptr.vmem [resolvable:$true] %s14_s7 }
   0x3   :  { %s73_s8 = scalar_lea.vmem %s15_s7, 256  ;;  %p78_p1 = scmp.lt.s32.totalorder %s15_s7, %s15_s7 }
   0x4   :  { %p74_p0 = scmp.ne.s32.totalorder %s15_s7, %s73_s8  ;;  %p79_p2 = scmp.lt.s32.totalorder %s73_s8, %s73_s8 }
   0x6   :  { %p80_p3 = por %p79_p2, %p78_p1 }
   0x8   :  { %p81_p4 = pnand %p80_p3, %p74_p0 }
   0xa   :  { %84 = shalt.err (!%p81_p4)
}
   0xb   :  { %17 = dma.hbm_to_vmem [thread:$0]  %s127_s0, 256, %s15_s7, [#allocation3]  }
   0xc   :  { %105 = dma.done.wait [#allocation3], 256  }
   0xd   :  { %106 = vsyncadd [#allocation3], 4294967040  ;;  %v21_v0 = vld [vmem:[#allocation2] sm:$0xff]  ;;  %v22_v1 = vld [vmem:[#allocation2 + $0x8] sm:$0xff]  ;;  %s110_s13 = smov [#allocation5]  }
   0xe   :  { %v23_v2 = vadd.f32 %v22_v1, %v21_v0  ;;  %s48_s14 = sshll.u32 %s110_s13, 4  ;;  %s49_s14 = int_to_ptr.vmem [resolvable:$true] %s48_s14 }
   0xf   :  { %s85_s15 = scalar_lea.vmem %s49_s14, 256  ;;  %p90_p6 = scmp.lt.s32.totalorder %s49_s14, %s49_s14 }
  0x10   :  { %24 = vadd.xlane.f32.xlu0 %v23_v2  ;;  %p86_p5 = scmp.ne.s32.totalorder %s49_s14, %s85_s15  ;;  %p91_p7 = scmp.lt.s32.totalorder %s85_s15, %s85_s15 }
  0x12   :  { %p92_p8 = por %p91_p7, %p90_p6 }
  0x14   :  { %p93_p9 = pnand %p92_p8, %p86_p5 }
  0x99   :  { %v25_v3 = vpop.xlane.xlu0 %24 }
  0x9a   :  { %v26_v4 = vrot.slane %v25_v3, 4 }
  0x9c   :  { %v27_v5 = vadd.f32 %v26_v4, %v25_v3 }
  0x9e   :  { %v28_v6 = vrot.slane %v27_v5, 2 }
  0xa0   :  { %v29_v7 = vadd.f32 %v28_v6, %v27_v5 }
  0xa2   :  { %v30_v8 = vrot.slane %v29_v7, 1 }
  0xa4   :  { %v31_v9 = vadd.f32 %v30_v8, %v29_v7 }
  0xa6   :  { %57 = vpush %v31_v9 }
  0xd7   :  { %s58_s11 = spop %57 }
  0xd8   :  { %v33_v10 = vstv %s58_s11 }
  0xd9   :  { %63 = vrcp.f32 %v33_v10 }
  0xe6   :  { %v64_v11 = vpop.eup %63 }
  0xe7   :  { %59 = vpush %v64_v11 }
 0x118   :  { %s60_s0 = spop %59 }
 0x119   :  { %s36_s12 = smul.f32 2048.0, %s60_s0 }
 0x11b   :  { %v37_v12 = vstv %s36_s12 }
 0x11c   :  { %v38_v13 = vmul.f32 %v37_v12, %v21_v0  ;;  %v39_v14 = vmul.f32 %v37_v12, %v22_v1 }
 0x11e   :  { %40 = vst [vmem:[#allocation5] sm:$0xff] %v38_v13  ;;  %41 = vst [vmem:[#allocation5 + $0x8] sm:$0xff] %v39_v14 }
 0x11f   :  { %96 = shalt.err (!%p93_p9)
}
 0x120   :  { %51 = dma.vmem_to_hbm [thread:$0]  %s49_s14, 256, %s128_s1, [#allocation4]  }
 0x121   :  { %107 = dma.done.wait [#allocation4], 256  }
 0x122   :  { %108 = vsyncadd [#allocation4], 4294967040 }
 0x123   :  { %55 = vsyncpa [#allocation3], 1 }
 0x124   :  { %56 = vsyncpa [#allocation4], 1 }

</bundles_post_ra>
